<compile_context>
chip_gen: v5e
topology: v5e:2x2
jax: 0.10.0
libtpu: 0.0.40
codegen_flags: <defaults>
</compile_context>

<pallas_src>
import functools

import jax
import jax.numpy as jnp
from jax.experimental import pallas as pl
from jax.experimental.pallas import tpu as pltpu

EPS = 1e-6

_NVEC = 12  # packed per-channel parameter slots
(_LN1_W, _LN1_B, _B1, _B2, _BSCA, _B3, _BETA,
 _LN2_W, _LN2_B, _B4, _B5, _GAMMA) = range(_NVEC)


# --------------------------------------------------------------------------------------
# Stage 1: norm1 -> conv1 (1x1) -> conv2 (3x3 depthwise) -> SimpleGate  (+ partial pool)
# --------------------------------------------------------------------------------------
def _nafblock_stage1_kernel(x_ref, srcm_ref, keepm_ref, vec_ref, w1_ref, w2_ref,
                            g_ref, pool_ref, *, c_pad, inv_c, wp, compute_dtype):
    f32 = jnp.float32
    x = x_ref[0, 0].astype(f32)                       # (C_pad, SLAB)
    vec = vec_ref[...]                                # (2*C_pad, NVEC) f32
    ln1_w = vec[:c_pad, _LN1_W:_LN1_W + 1]
    ln1_b = vec[:c_pad, _LN1_B:_LN1_B + 1]
    b1 = vec[:, _B1:_B1 + 1]
    b2 = vec[:, _B2:_B2 + 1].astype(compute_dtype)

    # LayerNorm2d over channels, single reduction pass (var = E[x^2] - mu^2).
    # Sums run over padded channel rows (zeros) but divide by the real channel count.
    mu = jnp.sum(x, axis=0, keepdims=True) * inv_c
    ex2 = jnp.sum(x * x, axis=0, keepdims=True) * inv_c
    r = jax.lax.rsqrt(ex2 - mu * mu + EPS)
    xn = (((x - mu) * r) * ln1_w + ln1_b).astype(compute_dtype)   # cast once, at producer

    # conv1: lane-dense (2C, C) @ (C, SLAB) MXU matmul, f32 accumulation.
    h1 = jnp.dot(w1_ref[...], xn, preferred_element_type=f32) + b1

    # Depthwise-conv source: zero only the slab positions that are true image padding
    # (host-precomputed per-tile mask); interior halo rows stay live.
    src = h1.astype(compute_dtype) * srcm_ref[0]

    # 3x3 depthwise conv (padding=1) as 8 lane rolls + FMAs. The zero padding is baked
    # into the slab, so no per-tap border masks are needed; roll wrap-around only ever
    # lands on discarded halo/pad lanes.
    w2 = w2_ref[...]                                  # (2*C_pad, 9)
    slab = src.shape[1]
    acc = src * w2[:, 4:5] + b2                       # centre tap (kh = kw = 1)
    for kh in range(3):
        for kw in range(3):
            if kh == 1 and kw == 1:
                continue
            off = (kh - 1) * wp + (kw - 1)            # fetch pixel p + off
            shifted = pltpu.roll(src, shift=(-off) % slab, axis=1)
            acc = acc + shifted * w2[:, 3 * kh + kw:3 * kh + kw + 1]

    # SimpleGate; zero halo/pad lanes so every image pixel is pooled exactly once.
    g = (acc[:c_pad] * acc[c_pad:]) * keepm_ref[...]
    g_ref[0, 0] = g.astype(g_ref.dtype)
    pool_ref[0, 0] = jnp.sum(g, axis=1, keepdims=True, dtype=f32)


# --------------------------------------------------------------------------------------
# Stage 2: SCA scale -> conv3 -> residual, then norm2 -> conv4 -> SimpleGate -> conv5
# --------------------------------------------------------------------------------------
def _nafblock_stage2_kernel(x_ref, g_ref, pool_ref, vec_ref, wsca_ref, w3_ref, w4_ref,
                            w5_ref, out_ref, *, c_pad, inv_c, inv_hw, compute_dtype):
    f32 = jnp.float32
    x = x_ref[0, 0].astype(f32)                       # (C_pad, SLAB)
    g = g_ref[0, 0]                                   # (C_pad, SLAB), compute dtype
    vec = vec_ref[...]
    bsca = vec[:c_pad, _BSCA:_BSCA + 1]
    b3 = vec[:c_pad, _B3:_B3 + 1]
    beta = vec[:c_pad, _BETA:_BETA + 1]
    ln2_w = vec[:c_pad, _LN2_W:_LN2_W + 1]
    ln2_b = vec[:c_pad, _LN2_B:_LN2_B + 1]
    b4 = vec[:, _B4:_B4 + 1]
    b5 = vec[:c_pad, _B5:_B5 + 1]
    gamma = vec[:c_pad, _GAMMA:_GAMMA + 1]

    # SCA: completed global average pool (partial sums summed by the wrapper) through a
    # 1x1 conv, as a broadcast-multiply + lane reduction (no per-channel Python loop).
    pooled = pool_ref[0] * inv_hw                     # (1, C_pad) f32
    s = jnp.sum(wsca_ref[...] * pooled, axis=1, keepdims=True) + bsca   # (C_pad, 1)

    gs = g * s.astype(compute_dtype)
    h3 = jnp.dot(w3_ref[...], gs, preferred_element_type=f32) + b3
    y = x + h3 * beta                                 # first residual
    # TODO(synk): dropout1/dropout2 are nn.Identity at drop_out_rate=0.0 (module default).

    # Second LayerNorm (single pass) + FFN branch.
    mu = jnp.sum(y, axis=0, keepdims=True) * inv_c
    ey2 = jnp.sum(y * y, axis=0, keepdims=True) * inv_c
    r = jax.lax.rsqrt(ey2 - mu * mu + EPS)
    yn = (((y - mu) * r) * ln2_w + ln2_b).astype(compute_dtype)
    h4 = jnp.dot(w4_ref[...], yn, preferred_element_type=f32) + b4
    g2 = (h4[:c_pad] * h4[c_pad:]).astype(compute_dtype)
    h5 = jnp.dot(w5_ref[...], g2, preferred_element_type=f32) + b5
    out_ref[0, 0] = (y + h5 * gamma).astype(out_ref.dtype)


# --------------------------------------------------------------------------------------
# Wrapper
# --------------------------------------------------------------------------------------
def _choose_tile_rows(H, W, c_pad, itemsize, budget_bytes=12 * 1024 * 1024):
    """Largest row-band height dividing H whose stage-1 working set fits the budget."""
    fits = [1]
    for th in range(1, H + 1):
        if H % th:
            continue
        slab = -(-((th + 2) * (W + 2)) // 128) * 128
        per_tile = slab * (3 * c_pad * 4                       # x slab (f32) + double buffer
                           + 2 * c_pad * 4                     # h1 (f32)
                           + 3 * 2 * c_pad * itemsize          # src / acc / shifted
                           + 3 * c_pad * itemsize)             # g out + double buffer
        if per_tile <= budget_bytes:
            fits.append(th)
    return max(fits)


def nafblock_pallas(x_nchw, params, *, matmul_dtype=jnp.bfloat16, tile_rows=None):
    """NAFBlock forward, NCHW in / NCHW out.

    matmul_dtype is also the depthwise/elementwise compute dtype: bf16 (default, good
    for v6e/v7x) or float32 (v5e / tight numerics).
    """
    N, C, H, W = x_nchw.shape
    f32 = jnp.float32
    compute_dtype = jnp.dtype(matmul_dtype)
    cmult = 8 if compute_dtype.itemsize >= 4 else 16   # sublane-tile multiple
    c_pad = -(-C // cmult) * cmult
    c2 = 2 * c_pad

    if tile_rows is None:
        tile_rows = _choose_tile_rows(H, W, c_pad, compute_dtype.itemsize)
    if H % tile_rows:
        raise ValueError(f"tile_rows={tile_rows} must divide H={H}")
    th = tile_rows
    num_tiles = H // th
    thp, wp = th + 2, W + 2
    slab = thp * wp
    slab_p = -(-slab // 128) * 128                     # lane-dense slab length

    # ---- input tiles: zero-padded row bands with their 1-row halo baked in ----------
    xp = jnp.pad(x_nchw.astype(f32), ((0, 0), (0, c_pad - C), (1, 1), (1, 1)))
    x_tiles = jnp.stack([xp[:, :, t * th:t * th + thp, :] for t in range(num_tiles)],
                        axis=1).reshape(N, num_tiles, c_pad, slab)
    x_tiles = jnp.pad(x_tiles, ((0, 0), (0, 0), (0, 0), (0, slab_p - slab)))

    # ---- host-precomputed masks ------------------------------------------------------
    lane = jnp.arange(slab_p, dtype=jnp.int32)
    rr, cc = lane // wp, lane % wp
    valid = lane < slab
    col_ok = valid & (cc >= 1) & (cc <= W)
    keep = (col_ok & (rr >= 1) & (rr <= th)).astype(compute_dtype).reshape(1, slab_p)
    src_rows = []
    for t in range(num_tiles):
        ok = col_ok
        if t == 0:
            ok = ok & (rr >= 1)                        # top image border
        if t == num_tiles - 1:
            ok = ok & (rr <= th)                       # bottom image border
        src_rows.append(ok)
    src_mask = jnp.stack(src_rows).astype(compute_dtype).reshape(num_tiles, 1, slab_p)

    # ---- parameter packing (channel-padded, gate-split row layout) -------------------
    def vcol_c(v):            # (1, C) -> (2*c_pad,), values in rows [:C]
        return jnp.zeros((c2,), f32).at[:C].set(jnp.asarray(v, f32).reshape(-1))

    def vcol_2c(v):           # (1, 2C) -> (2*c_pad,), halves at rows 0 / c_pad
        v = jnp.asarray(v, f32).reshape(-1)
        return jnp.zeros((c2,), f32).at[:C].set(v[:C]).at[c_pad:c_pad + C].set(v[C:])

    cols = [None] * _NVEC
    cols[_LN1_W], cols[_LN1_B] = vcol_c(params["ln1_w"]), vcol_c(params["ln1_b"])
    cols[_B1], cols[_B2] = vcol_2c(params["b1"]), vcol_2c(params["b2"])
    cols[_BSCA], cols[_B3] = vcol_c(params["bsca"]), vcol_c(params["b3"])
    cols[_BETA] = vcol_c(params["beta"])
    cols[_LN2_W], cols[_LN2_B] = vcol_c(params["ln2_w"]), vcol_c(params["ln2_b"])
    cols[_B4], cols[_B5] = vcol_2c(params["b4"]), vcol_c(params["b5"])
    cols[_GAMMA] = vcol_c(params["gamma"])
    vec = jnp.stack(cols, axis=1)                      # (2*c_pad, NVEC)

    def w_expand(w):          # (Cin=C, Cout=2C) -> (2*c_pad, c_pad), gate-split out rows
        wt = jnp.asarray(w, f32).T
        out = jnp.zeros((c2, c_pad), f32)
        return out.at[:C, :C].set(wt[:C]).at[c_pad:c_pad + C, :C].set(wt[C:])

    def w_square(w):          # (Cin=C, Cout=C) -> (c_pad, c_pad)
        return jnp.zeros((c_pad, c_pad), f32).at[:C, :C].set(jnp.asarray(w, f32).T)

    def w_dw(w):              # (9, 2C) depthwise taps -> (2*c_pad, 9), gate-split rows
        wt = jnp.asarray(w, f32).T
        out = jnp.zeros((c2, 9), f32)
        return out.at[:C, :].set(wt[:C]).at[c_pad:c_pad + C, :].set(wt[C:])

    w1 = w_expand(params["w1"]).astype(compute_dtype)
    w2 = w_dw(params["w2"]).astype(compute_dtype)
    wsca = w_square(params["wsca"])                    # stays f32 (VPU reduction)
    w3 = w_square(params["w3"]).astype(compute_dtype)
    w4 = w_expand(params["w4"]).astype(compute_dtype)
    w5 = w_square(params["w5"]).astype(compute_dtype)

    # ---- pallas calls -----------------------------------------------------------------
    cparams = pltpu.CompilerParams(
        dimension_semantics=("parallel", "parallel"),  # batch x row-band (v7x dual-TC)
        vmem_limit_bytes=48 * 1024 * 1024)             # explicit, headroom on v7x (64 MiB)

    tile_spec = pl.BlockSpec((1, 1, c_pad, slab_p), lambda n, t: (n, t, 0, 0))
    const2 = lambda shape: pl.BlockSpec(shape, lambda n, t: (0, 0))

    g_tiles, pool_part = pl.pallas_call(
        functools.partial(_nafblock_stage1_kernel, c_pad=c_pad, inv_c=1.0 / C, wp=wp,
                          compute_dtype=compute_dtype),
        out_shape=(jax.ShapeDtypeStruct((N, num_tiles, c_pad, slab_p), compute_dtype),
                   jax.ShapeDtypeStruct((N, num_tiles, c_pad, 1), f32)),
        grid_spec=pltpu.PrefetchScalarGridSpec(
            num_scalar_prefetch=0,
            grid=(N, num_tiles),
            in_specs=[
                tile_spec,                                               # x slab
                pl.BlockSpec((1, 1, slab_p), lambda n, t: (t, 0, 0)),    # per-tile src mask
                const2((1, slab_p)),                                     # interior mask
                const2((c2, _NVEC)),                                     # packed vectors
                const2((c2, c_pad)),                                     # w1
                const2((c2, 9)),                                         # dw taps
            ],
            out_specs=(tile_spec,
                       pl.BlockSpec((1, 1, c_pad, 1), lambda n, t: (n, t, 0, 0))),
        ),
        compiler_params=cparams,
    )(x_tiles, src_mask, keep, vec, w1, w2)

    # Finish the global average pool: sum the per-tile partial sums (tiny, XLA-side),
    # delivered to stage 2 as a (1, C_pad) row so the SCA reduction is a lane reduce.
    pool_row = jnp.sum(pool_part, axis=1).reshape(N, 1, c_pad)

    out_tiles = pl.pallas_call(
        functools.partial(_nafblock_stage2_kernel, c_pad=c_pad, inv_c=1.0 / C,
                          inv_hw=1.0 / (H * W), compute_dtype=compute_dtype),
        out_shape=jax.ShapeDtypeStruct((N, num_tiles, c_pad, slab_p), x_nchw.dtype),
        grid_spec=pltpu.PrefetchScalarGridSpec(
            num_scalar_prefetch=0,
            grid=(N, num_tiles),
            in_specs=[
                tile_spec,                                               # x slab
                tile_spec,                                               # g slab
                pl.BlockSpec((1, 1, c_pad), lambda n, t: (n, 0, 0)),     # pooled sums
                const2((c2, _NVEC)),
                const2((c_pad, c_pad)),                                  # wsca (f32)
                const2((c_pad, c_pad)),                                  # w3
                const2((c2, c_pad)),                                     # w4
                const2((c_pad, c_pad)),                                  # w5
            ],
            out_specs=tile_spec,
        ),
        compiler_params=cparams,
    )(x_tiles, g_tiles, pool_row, vec, wsca, w3, w4, w5)

    # Drop lane padding / halo ring / channel padding and reassemble NCHW.
    out = out_tiles[..., :slab].reshape(N, num_tiles, c_pad, thp, wp)
    out = out[:, :, :C, 1:1 + th, 1:1 + W]
    return out.transpose(0, 2, 1, 3, 4).reshape(N, C, H, W)


# --------------------------------------------------------------------------------------
# Pure-JAX reference (mirrors the PyTorch module, f32) and test setup
# --------------------------------------------------------------------------------------
def nafblock_ref(x, p):
    N, C, H, W = x.shape

    def ln(t, w, b):
        mu = t.mean(1, keepdims=True)
        var = ((t - mu) ** 2).mean(1, keepdims=True)
        y = (t - mu) / jnp.sqrt(var + EPS)
        return w.reshape(1, C, 1, 1) * y + b.reshape(1, C, 1, 1)

    def c1x1(t, w, b):  # w: (Cin, Cout)
        return jnp.einsum("nchw,co->nohw", t, w) + b.reshape(1, -1, 1, 1)

    def dwconv(t, w, b):  # w: (9, 2C)
        k = w.reshape(3, 3, -1)
        tp = jnp.pad(t, ((0, 0), (0, 0), (1, 1), (1, 1)))
        out = jnp.zeros_like(t) + b.reshape(1, -1, 1, 1)
        for dh in range(3):
            for dw in range(3):
                out = out + tp[:, :, dh:dh + H, dw:dw + W] * k[dh, dw].reshape(1, -1, 1, 1)
        return out

    def sg(t):
        c2 = t.shape[1] // 2
        return t[:, :c2] * t[:, c2:]

    x1 = ln(x, p["ln1_w"], p["ln1_b"])
    x1 = c1x1(x1, p["w1"], p["b1"])
    x1 = dwconv(x1, p["w2"], p["b2"])
    x1 = sg(x1)
    pooled = x1.mean((2, 3), keepdims=True)
    s = c1x1(pooled, p["wsca"], p["bsca"])
    x1 = x1 * s
    x1 = c1x1(x1, p["w3"], p["b3"])
    y = x + x1 * p["beta"].reshape(1, C, 1, 1)
    x2 = c1x1(ln(y, p["ln2_w"], p["ln2_b"]), p["w4"], p["b4"])
    x2 = sg(x2)
    x2 = c1x1(x2, p["w5"], p["b5"])
    return y + x2 * p["gamma"].reshape(1, C, 1, 1)


def make_params(key, c):
    c2 = 2 * c
    ks = jax.random.split(key, 16)
    u = lambda k, shape, s=0.2: (jax.random.normal(k, shape, jnp.float32) * s)
    return {
        "ln1_w": jnp.ones((1, c), jnp.float32),
        "ln1_b": jnp.zeros((1, c), jnp.float32),
        "w1": u(ks[0], (c, c2)),
        "b1": u(ks[1], (1, c2), 0.05),
        "w2": u(ks[2], (9, c2)),          # depthwise 3x3 weights, row = 3*dh + dw
        "b2": u(ks[3], (1, c2), 0.05),
        "wsca": u(ks[4], (c, c)),
        "bsca": u(ks[5], (1, c), 0.05),
        "w3": u(ks[6], (c, c)),
        "b3": u(ks[7], (1, c), 0.05),
        # NOTE: PyTorch initializes beta/gamma to zero (block == identity); use nonzero
        # values so the kernel math is actually exercised.
        "beta": u(ks[8], (1, c), 0.5),
        "ln2_w": jnp.ones((1, c), jnp.float32),
        "ln2_b": jnp.zeros((1, c), jnp.float32),
        "w4": u(ks[9], (c, c2)),
        "b4": u(ks[10], (1, c2), 0.05),
        "w5": u(ks[11], (c, c)),
        "b5": u(ks[12], (1, c), 0.05),
        "gamma": u(ks[13], (1, c), 0.5),
    }


if __name__ == "__main__":
    key = jax.random.PRNGKey(0)
    kx, kp = jax.random.split(key)
    N, C, H, W = 2, 4, 16, 16
    x = jax.random.normal(kx, (N, C, H, W), jnp.float32)
    params = make_params(kp, C)

    ref = nafblock_ref(x, params)

    # f32 path (tile_rows=8 -> 2 row bands: exercises halos + two-pass pooling).
    out_f32 = jax.block_until_ready(
        nafblock_pallas(x, params, matmul_dtype=jnp.float32, tile_rows=8))
    if not bool(jnp.allclose(out_f32, ref, atol=2e-3, rtol=2e-3)):
        raise AssertionError(
            f"f32 mismatch: max abs err = {float(jnp.max(jnp.abs(out_f32 - ref)))}")

    # Default bf16 path (bf16 MXU + bf16 depthwise/elementwise branch) -- looser tolerance.
    out_bf16 = jax.block_until_ready(nafblock_pallas(x, params, tile_rows=8))
    if not bool(jnp.allclose(out_bf16, ref, atol=5e-2, rtol=5e-2)):
        raise AssertionError(
            f"bf16 mismatch: max abs err = {float(jnp.max(jnp.abs(out_bf16 - ref)))}")

    print("KERNEL_OK")
</pallas_src>

<mosaic_0001>
module attributes {stable_mosaic.version = 11 : i64} {
  func.func @_nafblock_stage1_kernel(%arg0: i32, %arg1: i32, %arg2: memref<1x1x8x256xf32, #tpu.memory_space<vmem>>, %arg3: memref<1x1x256xf32, #tpu.memory_space<vmem>>, %arg4: memref<1x256xf32, #tpu.memory_space<vmem>>, %arg5: memref<16x12xf32, #tpu.memory_space<vmem>>, %arg6: memref<16x8xf32, #tpu.memory_space<vmem>>, %arg7: memref<16x9xf32, #tpu.memory_space<vmem>>, %arg8: memref<1x1x8x256xf32, #tpu.memory_space<vmem>>, %arg9: memref<1x1x8x1xf32, #tpu.memory_space<vmem>>) attributes {dimension_semantics = [#tpu.dimension_semantics<parallel>, #tpu.dimension_semantics<parallel>], iteration_bounds = array<i64: 2, 2>, scalar_prefetch = 0 : i64, scratch_operands = 0 : i64, tpu.core_type = #tpu.core_type<tc>, window_params = [{transform_indices = @transform_0, window_bounds = array<i64: 1, 1, 8, 256>}, {transform_indices = @transform_1, window_bounds = array<i64: 1, 1, 256>}, {pipeline_mode = #tpu.pipeline_mode<synchronous>, transform_indices = @transform_2, window_bounds = array<i64: 1, 256>}, {pipeline_mode = #tpu.pipeline_mode<synchronous>, transform_indices = @transform_3, window_bounds = array<i64: 16, 12>}, {pipeline_mode = #tpu.pipeline_mode<synchronous>, transform_indices = @transform_4, window_bounds = array<i64: 16, 8>}, {pipeline_mode = #tpu.pipeline_mode<synchronous>, transform_indices = @transform_5, window_bounds = array<i64: 16, 9>}, {transform_indices = @transform_6, window_bounds = array<i64: 1, 1, 8, 256>}, {transform_indices = @transform_7, window_bounds = array<i64: 1, 1, 8, 1>}]} {
    %c0 = arith.constant 0 : index
    %c0_0 = arith.constant 0 : index
    %c0_1 = arith.constant 0 : index
    %c0_2 = arith.constant 0 : index
    %0 = vector.load %arg2[%c0, %c0_0, %c0_1, %c0_2] : memref<1x1x8x256xf32, #tpu.memory_space<vmem>>, vector<1x1x8x256xf32>
    %1 = vector.shape_cast %0 : vector<1x1x8x256xf32> to vector<8x256xf32>
    %c0_3 = arith.constant 0 : index
    %c0_4 = arith.constant 0 : index
    %2 = vector.load %arg5[%c0_3, %c0_4] : memref<16x12xf32, #tpu.memory_space<vmem>>, vector<16x12xf32>
    %3 = vector.extract_strided_slice %2 {offsets = [0, 0], sizes = [8, 1], strides = [1, 1]} : vector<16x12xf32> to vector<8x1xf32>
    %4 = vector.extract_strided_slice %2 {offsets = [0, 1], sizes = [8, 1], strides = [1, 1]} : vector<16x12xf32> to vector<8x1xf32>
    %5 = vector.extract_strided_slice %2 {offsets = [0, 2], sizes = [16, 1], strides = [1, 1]} : vector<16x12xf32> to vector<16x1xf32>
    %6 = vector.extract_strided_slice %2 {offsets = [0, 3], sizes = [16, 1], strides = [1, 1]} : vector<16x12xf32> to vector<16x1xf32>
    %cst = arith.constant dense<0.000000e+00> : vector<256xf32>
    %7 = vector.multi_reduction <add>, %1, %cst [0] : vector<8x256xf32> to vector<256xf32>
    %8 = vector.shape_cast %7 : vector<256xf32> to vector<1x256xf32>
    %cst_5 = arith.constant 2.500000e-01 : f32
    %9 = vector.broadcast %cst_5 : f32 to vector<1x256xf32>
    %10 = arith.mulf %8, %9 : vector<1x256xf32>
    %11 = arith.mulf %1, %1 : vector<8x256xf32>
    %cst_6 = arith.constant dense<0.000000e+00> : vector<256xf32>
    %12 = vector.multi_reduction <add>, %11, %cst_6 [0] : vector<8x256xf32> to vector<256xf32>
    %13 = vector.shape_cast %12 : vector<256xf32> to vector<1x256xf32>
    %cst_7 = arith.constant 2.500000e-01 : f32
    %14 = vector.broadcast %cst_7 : f32 to vector<1x256xf32>
    %15 = arith.mulf %13, %14 : vector<1x256xf32>
    %16 = arith.mulf %10, %10 : vector<1x256xf32>
    %17 = arith.subf %15, %16 : vector<1x256xf32>
    %cst_8 = arith.constant 9.99999997E-7 : f32
    %18 = vector.broadcast %cst_8 : f32 to vector<1x256xf32>
    %19 = arith.addf %17, %18 : vector<1x256xf32>
    %20 = math.rsqrt %19 : vector<1x256xf32>
    %21 = vector.broadcast %10 : vector<1x256xf32> to vector<8x256xf32>
    %22 = arith.subf %1, %21 : vector<8x256xf32>
    %23 = vector.broadcast %20 : vector<1x256xf32> to vector<8x256xf32>
    %24 = arith.mulf %22, %23 : vector<8x256xf32>
    %25 = vector.broadcast %3 : vector<8x1xf32> to vector<8x256xf32>
    %26 = arith.mulf %24, %25 : vector<8x256xf32>
    %27 = vector.broadcast %4 : vector<8x1xf32> to vector<8x256xf32>
    %28 = arith.addf %26, %27 : vector<8x256xf32>
    %c0_9 = arith.constant 0 : index
    %c0_10 = arith.constant 0 : index
    %29 = vector.load %arg6[%c0_9, %c0_10] : memref<16x8xf32, #tpu.memory_space<vmem>>, vector<16x8xf32>
    %cst_11 = arith.constant dense<0.000000e+00> : vector<16x256xf32>
    %30 = tpu.matmul %29, %28, %cst_11 {dimension_numbers = #tpu.dot_dimension_numbers<[1], [0], [0], [1], [0, 0, 1, 1], [], []>} : vector<16x8xf32>, vector<8x256xf32>, vector<16x256xf32> -> vector<16x256xf32>
    %31 = vector.broadcast %5 : vector<16x1xf32> to vector<16x256xf32>
    %32 = arith.addf %30, %31 : vector<16x256xf32>
    %c0_12 = arith.constant 0 : index
    %c0_13 = arith.constant 0 : index
    %c0_14 = arith.constant 0 : index
    %33 = vector.load %arg3[%c0_12, %c0_13, %c0_14] : memref<1x1x256xf32, #tpu.memory_space<vmem>>, vector<1x1x256xf32>
    %34 = vector.shape_cast %33 : vector<1x1x256xf32> to vector<1x256xf32>
    %35 = vector.broadcast %34 : vector<1x256xf32> to vector<16x256xf32>
    %36 = arith.mulf %32, %35 : vector<16x256xf32>
    %c0_15 = arith.constant 0 : index
    %c0_16 = arith.constant 0 : index
    %37 = vector.load %arg7[%c0_15, %c0_16] : memref<16x9xf32, #tpu.memory_space<vmem>>, vector<16x9xf32>
    %38 = vector.extract_strided_slice %37 {offsets = [0, 4], sizes = [16, 1], strides = [1, 1]} : vector<16x9xf32> to vector<16x1xf32>
    %39 = vector.broadcast %38 : vector<16x1xf32> to vector<16x256xf32>
    %40 = arith.mulf %36, %39 : vector<16x256xf32>
    %41 = vector.broadcast %6 : vector<16x1xf32> to vector<16x256xf32>
    %42 = arith.addf %40, %41 : vector<16x256xf32>
    %c19_i32 = arith.constant 19 : i32
    %43 = tpu.dynamic_rotate %36 by %c19_i32 dim 1 : vector<16x256xf32>, i32 -> vector<16x256xf32>
    %44 = vector.extract_strided_slice %37 {offsets = [0, 0], sizes = [16, 1], strides = [1, 1]} : vector<16x9xf32> to vector<16x1xf32>
    %45 = vector.broadcast %44 : vector<16x1xf32> to vector<16x256xf32>
    %46 = arith.mulf %43, %45 : vector<16x256xf32>
    %47 = arith.addf %42, %46 : vector<16x256xf32>
    %c18_i32 = arith.constant 18 : i32
    %48 = tpu.dynamic_rotate %36 by %c18_i32 dim 1 : vector<16x256xf32>, i32 -> vector<16x256xf32>
    %49 = vector.extract_strided_slice %37 {offsets = [0, 1], sizes = [16, 1], strides = [1, 1]} : vector<16x9xf32> to vector<16x1xf32>
    %50 = vector.broadcast %49 : vector<16x1xf32> to vector<16x256xf32>
    %51 = arith.mulf %48, %50 : vector<16x256xf32>
    %52 = arith.addf %47, %51 : vector<16x256xf32>
    %c17_i32 = arith.constant 17 : i32
    %53 = tpu.dynamic_rotate %36 by %c17_i32 dim 1 : vector<16x256xf32>, i32 -> vector<16x256xf32>
    %54 = vector.extract_strided_slice %37 {offsets = [0, 2], sizes = [16, 1], strides = [1, 1]} : vector<16x9xf32> to vector<16x1xf32>
    %55 = vector.broadcast %54 : vector<16x1xf32> to vector<16x256xf32>
    %56 = arith.mulf %53, %55 : vector<16x256xf32>
    %57 = arith.addf %52, %56 : vector<16x256xf32>
    %c1_i32 = arith.constant 1 : i32
    %58 = tpu.dynamic_rotate %36 by %c1_i32 dim 1 : vector<16x256xf32>, i32 -> vector<16x256xf32>
    %59 = vector.extract_strided_slice %37 {offsets = [0, 3], sizes = [16, 1], strides = [1, 1]} : vector<16x9xf32> to vector<16x1xf32>
    %60 = vector.broadcast %59 : vector<16x1xf32> to vector<16x256xf32>
    %61 = arith.mulf %58, %60 : vector<16x256xf32>
    %62 = arith.addf %57, %61 : vector<16x256xf32>
    %c255_i32 = arith.constant 255 : i32
    %63 = tpu.dynamic_rotate %36 by %c255_i32 dim 1 : vector<16x256xf32>, i32 -> vector<16x256xf32>
    %64 = vector.extract_strided_slice %37 {offsets = [0, 5], sizes = [16, 1], strides = [1, 1]} : vector<16x9xf32> to vector<16x1xf32>
    %65 = vector.broadcast %64 : vector<16x1xf32> to vector<16x256xf32>
    %66 = arith.mulf %63, %65 : vector<16x256xf32>
    %67 = arith.addf %62, %66 : vector<16x256xf32>
    %c239_i32 = arith.constant 239 : i32
    %68 = tpu.dynamic_rotate %36 by %c239_i32 dim 1 : vector<16x256xf32>, i32 -> vector<16x256xf32>
    %69 = vector.extract_strided_slice %37 {offsets = [0, 6], sizes = [16, 1], strides = [1, 1]} : vector<16x9xf32> to vector<16x1xf32>
    %70 = vector.broadcast %69 : vector<16x1xf32> to vector<16x256xf32>
    %71 = arith.mulf %68, %70 : vector<16x256xf32>
    %72 = arith.addf %67, %71 : vector<16x256xf32>
    %c238_i32 = arith.constant 238 : i32
    %73 = tpu.dynamic_rotate %36 by %c238_i32 dim 1 : vector<16x256xf32>, i32 -> vector<16x256xf32>
    %74 = vector.extract_strided_slice %37 {offsets = [0, 7], sizes = [16, 1], strides = [1, 1]} : vector<16x9xf32> to vector<16x1xf32>
    %75 = vector.broadcast %74 : vector<16x1xf32> to vector<16x256xf32>
    %76 = arith.mulf %73, %75 : vector<16x256xf32>
    %77 = arith.addf %72, %76 : vector<16x256xf32>
    %c237_i32 = arith.constant 237 : i32
    %78 = tpu.dynamic_rotate %36 by %c237_i32 dim 1 : vector<16x256xf32>, i32 -> vector<16x256xf32>
    %79 = vector.extract_strided_slice %37 {offsets = [0, 8], sizes = [16, 1], strides = [1, 1]} : vector<16x9xf32> to vector<16x1xf32>
    %80 = vector.broadcast %79 : vector<16x1xf32> to vector<16x256xf32>
    %81 = arith.mulf %78, %80 : vector<16x256xf32>
    %82 = arith.addf %77, %81 : vector<16x256xf32>
    %83 = vector.extract_strided_slice %82 {offsets = [0, 0], sizes = [8, 256], strides = [1, 1]} : vector<16x256xf32> to vector<8x256xf32>
    %84 = vector.extract_strided_slice %82 {offsets = [8, 0], sizes = [8, 256], strides = [1, 1]} : vector<16x256xf32> to vector<8x256xf32>
    %85 = arith.mulf %83, %84 : vector<8x256xf32>
    %c0_17 = arith.constant 0 : index
    %c0_18 = arith.constant 0 : index
    %86 = vector.load %arg4[%c0_17, %c0_18] : memref<1x256xf32, #tpu.memory_space<vmem>>, vector<1x256xf32>
    %87 = vector.broadcast %86 : vector<1x256xf32> to vector<8x256xf32>
    %88 = arith.mulf %85, %87 : vector<8x256xf32>
    %c0_19 = arith.constant 0 : index
    %c0_20 = arith.constant 0 : index
    %c0_21 = arith.constant 0 : index
    %c0_22 = arith.constant 0 : index
    %89 = vector.load %arg8[%c0_19, %c0_20, %c0_21, %c0_22] : memref<1x1x8x256xf32, #tpu.memory_space<vmem>>, vector<1x1x8x256xf32>
    %90 = vector.shape_cast %89 : vector<1x1x8x256xf32> to vector<8x256xf32>
    %91 = vector.shape_cast %88 : vector<8x256xf32> to vector<1x1x8x256xf32>
    tpu.vector_store %arg8[%c0_19, %c0_20, %c0_21, %c0_22], %91 {strides = array<i32>} : memref<1x1x8x256xf32, #tpu.memory_space<vmem>>, vector<1x1x8x256xf32>,
    %cst_23 = arith.constant dense<0.000000e+00> : vector<8xf32>
    %92 = vector.multi_reduction <add>, %88, %cst_23 [1] : vector<8x256xf32> to vector<8xf32>
    %93 = vector.shape_cast %92 : vector<8xf32> to vector<8x1xf32>
    %c0_24 = arith.constant 0 : index
    %c0_25 = arith.constant 0 : index
    %c0_26 = arith.constant 0 : index
    %c0_27 = arith.constant 0 : index
    %94 = vector.load %arg9[%c0_24, %c0_25, %c0_26, %c0_27] : memref<1x1x8x1xf32, #tpu.memory_space<vmem>>, vector<1x1x8x1xf32>
    %95 = vector.shape_cast %94 : vector<1x1x8x1xf32> to vector<8x1xf32>
    %96 = vector.shape_cast %93 : vector<8x1xf32> to vector<1x1x8x1xf32>
    tpu.vector_store %arg9[%c0_24, %c0_25, %c0_26, %c0_27], %96 {strides = array<i32>} : memref<1x1x8x1xf32, #tpu.memory_space<vmem>>, vector<1x1x8x1xf32>,
    return
  }
  func.func @transform_0(%arg0: i32, %arg1: i32) -> (i32, i32, i32, i32) {
    %c0_i32 = arith.constant 0 : i32
    %c0_i32_0 = arith.constant 0 : i32
    %c0_i32_1 = arith.constant 0 : i32
    return %arg0, %arg1, %c0_i32, %c0_i32_0 : i32, i32, i32, i32
  }
  func.func @transform_1(%arg0: i32, %arg1: i32) -> (i32, i32, i32) {
    %c0_i32 = arith.constant 0 : i32
    %c0_i32_0 = arith.constant 0 : i32
    %c0_i32_1 = arith.constant 0 : i32
    return %arg1, %c0_i32, %c0_i32_0 : i32, i32, i32
  }
  func.func @transform_2(%arg0: i32, %arg1: i32) -> (i32, i32) {
    %c0_i32 = arith.constant 0 : i32
    %c0_i32_0 = arith.constant 0 : i32
    %c0_i32_1 = arith.constant 0 : i32
    return %c0_i32, %c0_i32_0 : i32, i32
  }
  func.func @transform_3(%arg0: i32, %arg1: i32) -> (i32, i32) {
    %c0_i32 = arith.constant 0 : i32
    %c0_i32_0 = arith.constant 0 : i32
    %c0_i32_1 = arith.constant 0 : i32
    return %c0_i32, %c0_i32_0 : i32, i32
  }
  func.func @transform_4(%arg0: i32, %arg1: i32) -> (i32, i32) {
    %c0_i32 = arith.constant 0 : i32
    %c0_i32_0 = arith.constant 0 : i32
    %c0_i32_1 = arith.constant 0 : i32
    return %c0_i32, %c0_i32_0 : i32, i32
  }
  func.func @transform_5(%arg0: i32, %arg1: i32) -> (i32, i32) {
    %c0_i32 = arith.constant 0 : i32
    %c0_i32_0 = arith.constant 0 : i32
    %c0_i32_1 = arith.constant 0 : i32
    return %c0_i32, %c0_i32_0 : i32, i32
  }
  func.func @transform_6(%arg0: i32, %arg1: i32) -> (i32, i32, i32, i32) {
    %c0_i32 = arith.constant 0 : i32
    %c0_i32_0 = arith.constant 0 : i32
    %c0_i32_1 = arith.constant 0 : i32
    return %arg0, %arg1, %c0_i32, %c0_i32_0 : i32, i32, i32, i32
  }
  func.func @transform_7(%arg0: i32, %arg1: i32) -> (i32, i32, i32, i32) {
    %c0_i32 = arith.constant 0 : i32
    %c0_i32_0 = arith.constant 0 : i32
    %c0_i32_1 = arith.constant 0 : i32
    return %arg0, %arg1, %c0_i32, %c0_i32_0 : i32, i32, i32, i32
  }
}

</mosaic_0001>

<bundles_post_ra>
// kernel: tpu_custom_call.1
= control target key start
LH: loop header
LB: loop body
LE: loop exit
PB: predicated region body
PF: predicated region fallthrough
CT: control target
= control target key end

     0   :  { %s1798_s0 = inlined_call_operand.hbm [shape: f32[2,2,8,256], index: 0, kind: input, shape index: {}]   ;;  %s1799_s1 = inlined_call_operand.vmem [shape: f32[2,1,256], index: 1, kind: input, shape index: {}]   ;;  %s1800_s2 = inlined_call_operand.vmem [shape: f32[1,256], index: 2, kind: input, shape index: {}]   ;;  %s1801_s3 = inlined_call_operand.vmem [shape: f32[16,12], index: 3, kind: input, shape index: {}]   ;;  %s1802_s4 = inlined_call_operand.vmem [shape: f32[16,8], index: 4, kind: input, shape index: {}]   ;;  %s1803_s5 = inlined_call_operand.hbm [shape: f32[16,9], index: 5, kind: input, shape index: {}]   ;;  %s1804_s6 = inlined_call_operand.hbm [shape: f32[2,2,8,256], index: 6, kind: output, shape index: {0}]   ;;  %s1805_s7 = inlined_call_operand.vmem [shape: f32[2,2,8,1], index: 7, kind: output, shape index: {1}]  }
   0x1   :  { %1813 = sst [smem:[#allocation16_spill]] %s1803_s5 }
   0x2   :  { %1814 = sst [smem:[#allocation17_spill]] %s1804_s6 }
   0x3   :  { %1815 = sst [smem:[#allocation18_spill]] %s1805_s7 }
   0x4   :  { %13 = vsyncpa [#allocation3], 0 }
   0x5   :  { %15 = vsyncpa [#allocation3 + $0x1], 0 }
   0x6   :  { %16 = vsyncpa [#allocation6], 0 }
   0x7   :  { %17 = vsyncpa [#allocation4], 0 }
   0x8   :  { %19 = vsyncpa [#allocation4 + $0x1], 0  ;;  %s1362_s24 = smov 0   ;;  %s1364_s25 = smov 0  }
   0x9   :  { %s1366_s26 = smov 0   ;;  %s1368_s27 = smov 0  }
   0xa   :  { %s1370_s28 = smov 0   ;;  %s1372_s29 = smov 0  }
   0xb   :  { %s1374_s30 = smov 0   ;;  %s1376_s8 = smov 0  }
   0xc LB: > { %1816 = sst [smem:[#allocation11_spill]] %s1272_s24  ;;  %s975_s9 = sadd.s32 4294967295, %s1300_s8   ;;  %s1300_s8 = sphi %s1376_s8, %s25_s8   ;;  %s1296_s30 = sphi %s1374_s30, %s1840_s30   ;;  %s1292_s29 = sphi %s1372_s29, %s1839_s29   ;;  %s1288_s28 = sphi %s1370_s28, %s1838_s28   ;;  %s1284_s27 = sphi %s1368_s27, %s1837_s27   ;;  %s1280_s26 = sphi %s1366_s26, %s1836_s26   ;;  %s1276_s25 = sphi %s1364_s25, %s1835_s25   ;;  %s1272_s24 = sphi %s1362_s24, %s1834_s24  }
   0xd   : > { %p977_p0 = scmp.ge.s32.totalorder %s1300_s8, 1  ;;  %p1404_p1 = scmp.eq.s32.totalorder %s975_s9, 0 }
   0xe   : > { %p236_p2 = scmp.lt.s32.totalorder %s1300_s8, 5  ;;  %s1818_s5 = sld [smem:[#allocation16_spill]] }
   0xf   : > { %s1302_s15 = smov [#allocation5]   ;;  %s1303_s17 = smov 128  }
  0x10   : > { %p1412_p3 = pnand %p977_p0, %p236_p2  ;;  %s258_s16 = sshll.u32 %s1302_s15, 4  ;;  %s259_s16 = int_to_ptr.vmem [resolvable:$true] %s258_s16 }
  0x11   : > { %s1304_s18 = smov 8   ;;  %s976_s19 = sadd.s32 4294967294, %s1300_s8  }
  0x12   : > { %p1011_p4 = pneg %p1412_p3  ;;  %s34_s20 = sadd.s32 1, %s1292_s29 }
  0x13   : > { %p35_p6 = scmp.ge.s32.totalorder %s34_s20, 2  ;;  %s37_s21 = sadd.s32 1, %s1296_s30 }
  0x14   : > { %s256_s13 = sshll.u32 %s1818_s5, 4  ;;  %p1012_p5 = pnand %p1011_p4, %p1404_p1  ;;  %s257_s13 = int_to_ptr.hbm [resolvable:$true] %s256_s13 }
  0x15   : > { %s46_s22 = sadd.s32 1, %s1280_s26  ;;  %p53_p7 = scmp.ne.s32.totalorder %s1280_s26, %s1276_s25 }
  0x16   : > { %1014 = dma.hbm_to_vmem [thread:$0]  (!%p1012_p5), %s257_s13, 256, %s259_s16, [#allocation6], %s1303_s17, %s1303_s17, %s1304_s18  }
  0x17   : > { %s1842_s20 = smov (%p35_p6, %s34_s20), 0  ;;  %s1844_s21 = smov (!%p35_p6, %s37_s21), %s1296_s30 }
  0x18   : > { %1820 = sst [smem:[#allocation12_spill]] %s1842_s20  ;;  %s42_s23 = ssub.s32 %s1292_s29, %s1842_s20 }
  0x19   : > { %p54_p8 = scmp.eq.s32.totalorder %s1300_s8, 0  ;;  %p39_p9 = scmp.ge.s32.totalorder %s1844_s21, 2 }
  0x1a   : > { %p59_p10 = scmp.ne.s32.totalorder %s1276_s25, %s1272_s24  ;;  %p195_p11 = scmp.eq.s32.totalorder %s975_s9, 3 }
  0x1b   : > { %p201_p12 = scmp.eq.s32.totalorder %s976_s19, 3  ;;  %s1846_s21 = smov (%p39_p9, %s1844_s21), 0 }
  0x1c   : > { %1821 = sst [smem:[#allocation13_spill]] %s1846_s21  ;;  %p1438_p13 = por %p1404_p1, %p59_p10 }
  0x1d   : > { %p1445_p0 = por %p195_p11, %p53_p7  ;;  %s41_s13 = ssub.s32 %s1296_s30, %s1846_s21 }
  0x1e   : > { %p1451_p2 = por %p201_p12, %p59_p10  ;;  %s43_s9 = sor.u32 %s42_s23, %s41_s13 }
  0x1f   : > { %s1823_s12 = scalar_select %p1445_p0, 1, 0 }
  0x20   : > { %s1825_s15 = scalar_select %p1451_p2, 1, 0 }
  0x21   : > { %1824 = sst [smem:[#allocation14_spill]] %s1823_s12  ;;  %p55_p4 = por %p54_p8, %p53_p7 }
  0x22   : > { %1826 = sst [smem:[#allocation15_spill]] %s1825_s15  ;;  %p44_p5 = scmp.eq.s32.totalorder %s43_s9, 0 }
  0x23   : > { %s272_s16 = sand.u32 1, %s1280_s26   ;;  %p1024_p6 = scmp.lt.s32.totalorder %s1300_s8, 4 }
  0x24   : > { %s980_s17 = sshll.u32 %s272_s16, 4  ;;  %s981_s19 = sshll.u32 %s1292_s29, 1 }
  0x25   : > { %s1461_s18 = scalar_select %p44_p5, %s1280_s26, %s46_s22  }
  0x26   : > { %s982_s5 = sshll.u32 %s1296_s30, 2  ;;  %s276_s20 = scalar_lea.vmem [#allocation2], %s980_s17 }
  0x27   : > { %s287_s24 = sshll.u32 %s276_s20, 4  ;;  %s281_s7 = sadd.s32 %s982_s5, %s981_s19  ;;  %s288_s24 = int_to_ptr.vmem [resolvable:$true] %s287_s24 }
  0x28   : > { %s983_s12 = sshll.u32 %s281_s7, 3  ;;  %p1016_p9 = pnand %p1024_p6, %p55_p4 }
  0x29   : > { %s283_s15 = scalar_lea.hbm %s1798_s0, %s983_s12  ;;  %s273_s13 = scalar_lea.sflag [#allocation3], %s272_s16 }
  0x2a   : > { %s285_s23 = sshll.u32 %s283_s15, 4  ;;  %303 = sbr.rel (%p1412_p3) target bundleno = 673 (0x2a1), region = 44  ;;  %s286_s23 = int_to_ptr.hbm [resolvable:$true] %s285_s23 }
  0x2b   : > { %1018 = dma.hbm_to_vmem [thread:$0]  (!%p1016_p9), %s286_s23, 256, %s288_s24, %s273_s13  }
  0x2c   : > { %s1471_s22 = sand.u32 (!%p1412_p3), 1, %s1276_s25  }
  0x2d   : > { %s985_s5 = sshll.u32 (!%p1412_p3), %s1471_s22, 4  ;;  %s306_s7 = scalar_lea.sflag (!%p1412_p3), [#allocation3], %s1471_s22 }
  0x2e   : > { %s309_s6 = scalar_lea.vmem (!%p1412_p3), [#allocation2], %s985_s5 }
  0x2f   : > { %1259 = dma.done.wait (%p1438_p13), %s306_s7, 256  }
  0x30   : > { %1261 = vsyncadd (%p1438_p13), %s306_s7, 4294967040 }
  0x31   : > { %1263 = dma.done.wait (%p1404_p1), [#allocation6], 256  }
  0x32   : > { %1265 = vsyncadd (%p1404_p1), [#allocation6], 4294967040  ;;  %v1305_v0 = vmov 0   ;;  %v1489_v1 = vld [vmem:[%s1801_s3] sm:$0xff]  ;;  %v1306_v2 = vmov 1   ;;  %v1496_v4 = vld [vmem:[%s309_s6 + $0x8] sm:$0xff] }
  0x33   : > { %1111 = vset.pattern.permute.xlu0 %v1305_v0  ;;  %v1494_v3 = vld [vmem:[%s309_s6] sm:$0xff]  ;;  %v380_v7 = vrot.slane %v1496_v4, 4  ;;  %v389_v8 = vmul.f32 %v1496_v4, %v1496_v4  ;;  %v1307_v43 = vmov 2   ;;  %v373_v47 = vld [vmem:[%s1801_s3 + $0x8] sm:$0xff]  ;;  %v1308_v48 = vmov 4   ;;  %p358_p1 = scmp.lt.s32.totalorder %s1284_s27, 1 }
  0x34   : > { %436 = vperm.xlu0 %1111, %v1489_v1   ;;  %v374_v5 = vrot.slane %v1494_v3, 4  ;;  %v388_v6 = vmul.f32 %v1494_v3, %v1494_v3  ;;  %1113 = vset.pattern.permute.xlu1 %v1307_v43  ;;  %v1508_v46 = vld [vmem:[#allocation5] sm:$0xff]  ;;  %v1514_v53 = vld [vmem:[#allocation5 + $0x8] sm:$0xff]  ;;  %v1309_v56 = vmov 3   ;;  %vm458_vm6 = vcmask 64512   ;;  %s1313_s13 = smov 19  }
  0x35   : > { %v381_v11 = vadd.f32 %v380_v7, %v1496_v4  ;;  %v396_v12 = vrot.slane %v389_v8, 4  ;;  %450 = vperm.xlu1 %1113, %v1489_v1   ;;  %1114 = vset.pattern.permute.xlu2 %v1308_v48  ;;  %s1548_s9 = scalar_select %p358_p1, %s1284_s27, 1 }
  0x36   : > { %v375_v9 = vadd.f32 %v374_v5, %v1494_v3  ;;  %v390_v10 = vrot.slane %v388_v6, 4  ;;  %525 = vperm.xlu2 %1114, %v1508_v46   ;;  %s1314_s7 = smov 18   ;;  %s1315_s6 = smov 17  }
  0x37   : > { %v382_v15 = vrot.slane %v381_v11, 2  ;;  %v397_v16 = vadd.f32 %v396_v12, %v389_v8  ;;  %s988_s16 = sshll.u32 %s1548_s9, 1  ;;  %s1316_s24 = smov 1  }
  0x38   : > { %v376_v13 = vrot.slane %v375_v9, 2  ;;  %v391_v14 = vadd.f32 %v390_v10, %v388_v6  ;;  %s361_s23 = scalar_lea.vmem %s1799_s1, %s988_s16  ;;  %s1317_s14 = smov 127  }
  0x39   : > { %v383_v19 = vadd.f32 %v382_v15, %v381_v11  ;;  %v398_v20 = vrot.slane %v397_v16, 2  ;;  %v1312_v11 = vmov 7   ;;  %v511_v15 = vld [vmem:[%s361_s23] sm:$0x3]  ;;  %s1319_s10 = smov 111   ;;  %s1320_s20 = smov 110  }
  0x3a   : > { %v377_v17 = vadd.f32 %v376_v13, %v375_v9  ;;  %v392_v18 = vrot.slane %v391_v14, 2  ;;  %s1321_s21 = smov 109   ;;  %s996_s11 = sshll.u32 %s1284_s27, 1 }
  0x3b   : > { %v384_v23 = vrot.slane %v383_v19, 1  ;;  %v399_v24 = vadd.f32 %v398_v20, %v397_v16  ;;  %v513_v16 = vperm.slane %v511_v15, 0  ;;  %s997_s12 = sshll.u32 %s1288_s28, 2 }
  0x3c   : > { %1112 = vset.pattern.permute.xlu0 %v1306_v2  ;;  %v378_v21 = vrot.slane %v377_v17, 1  ;;  %v393_v22 = vadd.f32 %v392_v18, %v391_v14  ;;  %v514_v18 = vperm.slane %v511_v15, 1  ;;  %s820_s15 = sadd.s32 %s997_s12, %s996_s11 }
  0x3d   : > { %442 = vperm.xlu0 %1112, %v1489_v1   ;;  %v385_v27 = vadd.f32 %v384_v23, %v383_v19  ;;  %v400_v28 = vrot.slane %v399_v24, 1  ;;  %455 = vperm.xlu1 %1113, %v373_v47   ;;  %s998_s16 = sshll.u32 %s820_s15, 3 }
  0x3e   : > { %v379_v25 = vadd.f32 %v378_v21, %v377_v17  ;;  %v394_v26 = vrot.slane %v393_v22, 1  ;;  %530 = vperm.xlu2 %1114, %v1514_v53  }
  0x3f   : > { %v387_v31 = vmul.f32 0.25, %v385_v27  ;;  %v401_v32 = vadd.f32 %v400_v28, %v399_v24 }
  0x40   : > { %v386_v29 = vmul.f32 0.25, %v379_v25  ;;  %v395_v30 = vadd.f32 %v394_v26, %v393_v22 }
  0x41   : > { %v403_v35 = vmul.f32 0.25, %v401_v32  ;;  %v405_v36 = vmul.f32 %v387_v31, %v387_v31  ;;  %v431_v61 = vsub.f32 %v1496_v4, %v387_v31  ;;  %v448_v4 = vld [vmem:[%s1802_s4 + $0x8] sm:$0xff] }
  0x42   : > { %v402_v33 = vmul.f32 0.25, %v395_v30  ;;  %v404_v34 = vmul.f32 %v386_v29, %v386_v29  ;;  %v430_v60 = vsub.f32 %v1494_v3, %v386_v29  ;;  %v447_v3 = vld [vmem:[%s1802_s4] sm:$0xff] }
  0x43   : > { %v407_v38 = vsub.f32 %v403_v35, %v405_v36 }
  0x44   : > { %v406_v37 = vsub.f32 %v402_v33, %v404_v34 }
  0x45   : > { %v409_v40 = vadd.f32 1e-06, %v407_v38  ;;  %1115 = vset.pattern.permute.xlu1 %v1309_v56 }
  0x46   : > { %v408_v39 = vadd.f32 1e-06, %v406_v37  ;;  %538 = vperm.xlu1 %1115, %v1489_v1   ;;  %1116 = vset.pattern.permute.xlu2 %v1309_v56 }
  0x47   : > { %vm426_vm2 = vweird.f32 %v409_v40  ;;  %542 = vperm.xlu2 %1116, %v373_v47  }
  0x48   : > { %1134 = vrsqrt.f32 %v408_v39  ;;  %vm416_vm0 = vweird.f32 %v408_v39 }
  0x49   : > { %1136 = vrsqrt.f32 %v409_v40 }
  0x4e   : > { %v1135_v41 = vpop.eup %1134  ;;  %1117 = vset.pattern.permute.xlu1 %v1305_v0 }
  0x4f   : > { %v1137_v42 = vpop.eup %1136  ;;  %v411_v44 = vmul.f32 %v1135_v41, %v408_v39  ;;  %vm417_vm1 = vweird.f32 %v1135_v41  ;;  %565 = vperm.xlu1 %1117, %v1508_v46   ;;  %1118 = vset.pattern.permute.xlu2 %v1305_v0  ;;  %v1310_v0 = vmov 5  }
  0x50   : > { %v421_v45 = vmul.f32 %v1137_v42, %v409_v40  ;;  %vm427_vm3 = vweird.f32 %v1137_v42  ;;  %vm418_vm4 = vmor %vm416_vm0, %vm417_vm1  ;;  %569 = vperm.xlu2 %1118, %v1514_v53  }
  0x51   : > { %v412_v49 = vmul.f32 %v1135_v41, %v411_v44  ;;  %vm428_vm5 = vmor %vm426_vm2, %vm427_vm3 }
  0x52   : > { %v422_v50 = vmul.f32 %v1137_v42, %v421_v45 }
  0x53   : > { %v413_v51 = vmul.f32 0.5, %v412_v49 }
  0x54   : > { %v423_v52 = vmul.f32 0.5, %v422_v50 }
  0x55   : > { %v414_v54 = vsub.f32 1.5, %v413_v51 }
  0x56   : > { %v424_v55 = vsub.f32 1.5, %v423_v52 }
  0x57   : > { %v415_v57 = vmul.f32 %v1135_v41, %v414_v54  ;;  %1119 = vset.pattern.permute.xlu1 %v1306_v2 }
  0x58   : > { %v425_v58 = vmul.f32 %v1137_v42, %v424_v55  ;;  %594 = vperm.xlu1 %1119, %v1508_v46   ;;  %1120 = vset.pattern.permute.xlu2 %v1306_v2  ;;  %v1311_v2 = vmov 6  }
  0x59   : > { %v419_v62 = vsel %vm418_vm4, %v1135_v41, %v415_v57  ;;  %598 = vperm.xlu2 %1120, %v1514_v53  }
  0x5a   : > { %v429_v63 = vsel %vm428_vm5, %v1137_v42, %v425_v58  ;;  %v432_v5 = vmul.f32 %v430_v60, %v419_v62  ;;  %v1318_v42 = vmov 8  }
  0x5b   : > { %v433_v6 = vmul.f32 %v431_v61, %v429_v63  ;;  %1133 = vset.pattern.permute.xlu0 %v1318_v42 }
  0x60   : > { %1121 = vset.pattern.permute.xlu1 %v1307_v43 }
  0x61   : > { %623 = vperm.xlu1 %1121, %v1508_v46   ;;  %1122 = vset.pattern.permute.xlu2 %v1307_v43 }
  0x62   : > { %627 = vperm.xlu2 %1122, %v1514_v53  }
  0x69   : > { %1123 = vset.pattern.permute.xlu1 %v1309_v56 }
  0x6a   : > { %652 = vperm.xlu1 %1123, %v1508_v46   ;;  %1124 = vset.pattern.permute.xlu2 %v1309_v56  ;;  %v557_v56 = vlaneseq }
  0x6b   : > { %656 = vperm.xlu2 %1124, %v1514_v53  }
  0x6c   : > { %v1619_v57 = vand.u32 127, %v557_v56 }
  0x6e   : > { %vm559_vm7 = vcmp.lt.s32.totalorder %v1619_v57, 19  ;;  %vm588_vm8 = vcmp.lt.s32.totalorder %v1619_v57, 18  ;;  %vm617_vm9 = vcmp.lt.s32.totalorder %v1619_v57, 17  ;;  %vm646_vm10 = vcmp.lt.s32.totalorder %v1619_v57, 1 }
  0x6f   : > { %vm675_vm11 = vcmp.lt.s32.totalorder %v1619_v57, 127  ;;  %vm704_vm12 = vcmp.lt.s32.totalorder %v1619_v57, 111  ;;  %vm733_vm13 = vcmp.lt.s32.totalorder %v1619_v57, 110  ;;  %vm762_vm14 = vcmp.lt.s32.totalorder %v1619_v57, 109 }
  0x72   : > { %1125 = vset.pattern.permute.xlu1 %v1310_v0 }
  0x73   : > { %681 = vperm.xlu1 %1125, %v1508_v46   ;;  %1126 = vset.pattern.permute.xlu2 %v1310_v0 }
  0x74   : > { %685 = vperm.xlu2 %1126, %v1514_v53  }
  0x7b   : > { %1127 = vset.pattern.permute.xlu1 %v1311_v2 }
  0x7c   : > { %710 = vperm.xlu1 %1127, %v1508_v46   ;;  %1128 = vset.pattern.permute.xlu2 %v1311_v2 }
  0x7d   : > { %714 = vperm.xlu2 %1128, %v1514_v53  }
  0x84   : > { %1129 = vset.pattern.permute.xlu1 %v1312_v11 }
  0x85   : > { %739 = vperm.xlu1 %1129, %v1508_v46   ;;  %1130 = vset.pattern.permute.xlu2 %v1312_v11 }
  0x86   : > { %743 = vperm.xlu2 %1130, %v1514_v53  }
  0x8d   : > { %1131 = vset.pattern.permute.xlu1 %v1318_v42 }
  0x8e   : > { %1132 = vset.pattern.permute.xlu2 %v1318_v42 }
  0x90   : > { %v526_v13 = vpop.permute.xlu2 %525 }
  0x98   : > { %v531_v19 = vpop.permute.xlu2 %530 }
  0xa1   : > { %v543_v36 = vpop.permute.xlu2 %542 }
  0xa6   : > { %v437_v59 = vpop.permute.xlu0 %436 }
  0xa7   : > { %v439_v1 = vmul.f32 %v437_v59, %v432_v5  ;;  %v440_v7 = vmul.f32 %v437_v59, %v433_v6  ;;  %v451_v12 = vpop.permute.xlu1 %450 }
  0xaa   : > { %v1578_v41 = vpop.permute.xlu2 %569 }
  0xaf   : > { %v443_v8 = vpop.permute.xlu0 %442  ;;  %v456_v14 = vpop.permute.xlu1 %455 }
  0xb0   : > { %v445_v9 = vadd.f32 %v443_v8, %v439_v1  ;;  %v446_v10 = vadd.f32 %v443_v8, %v440_v7 }
  0xb2   : > { %480 = vmatpush.msra.mxu0 %v445_v9  ;;  %1001 = vmatpush.msra.mxu2 %v445_v9 }
  0xb3   : > { %503 = vmatpush.msra.mxu1 %v446_v10  ;;  %1002 = vmatpush.msra.mxu3 %v446_v10  ;;  %v1584_v43 = vpop.permute.xlu2 %598 }
  0xb4   : > { %991 = vmatmul.msk.f32.vlgmr.msra.gmra.mxu0 %vm458_vm6, %v447_v3  ;;  %992 = vmatmul.msk.f32.vlgmr.msra.gmra.mxu2 %vm458_vm6, %v448_v4 }
  0xb5   : > { %993 = vmatmul.msk.f32.vlgmr.msra.gmra.mxu1 %vm458_vm6, %v447_v3  ;;  %994 = vmatmul.msk.f32.vlgmr.msra.gmra.mxu3 %vm458_vm6, %v448_v4 }
  0xb8   : > { %v539_v25 = vpop.permute.xlu1 %538 }
  0xbc   : > { %v1589_v45 = vpop.permute.xlu2 %627 }
  0xc1   : > { %v566_v44 = vpop.permute.xlu1 %565 }
  0xc5   : > { %v1594_v48 = vpop.permute.xlu2 %656 }
  0xca   : > { %v595_v47 = vpop.permute.xlu1 %594 }
  0xce   : > { %v1601_v50 = vpop.permute.xlu2 %685 }
  0xd3   : > { %v624_v49 = vpop.permute.xlu1 %623 }
  0xd7   : > { %v1607_v52 = vpop.permute.xlu2 %714 }
  0xdc   : > { %v653_v51 = vpop.permute.xlu1 %652 }
  0xe0   : > { %v1611_v55 = vpop.permute.xlu2 %743 }
  0xe5   : > { %v682_v54 = vpop.permute.xlu1 %681 }
 0x131   : > { %v482_v17 = vpop.f32.mrf.mxu0 }
 0x132   : > { %v483_v20 = vadd.f32 %v482_v17, %v451_v12  ;;  %v505_v21 = vpop.f32.mrf.mxu1 }
 0x133   : > { %v506_v22 = vadd.f32 %v505_v21, %v451_v12 }
 0x134   : > { %v517_v23 = vmul.f32 %v513_v16, %v483_v20 }
 0x135   : > { %v518_v24 = vmul.f32 %v514_v18, %v506_v22 }
 0x136   : > { %549 = vrot.lane.b32.xlu0 %v517_v23, %s1313_s13  ;;  %v533_v26 = vmul.f32 %v526_v13, %v517_v23 }
 0x137   : > { %553 = vrot.lane.b32.xlu2 %v518_v24, %s1313_s13  ;;  %v534_v27 = vmul.f32 %v526_v13, %v518_v24  ;;  %v485_v28 = vpop.f32.mrf.mxu2 }
 0x138   : > { %v1556_v29 = vadd.f32 %v539_v25, %v533_v26  ;;  %v486_v30 = vadd.f32 %v485_v28, %v456_v14  ;;  %v508_v31 = vpop.f32.mrf.mxu3 }
 0x139   : > { %v1558_v32 = vadd.f32 %v539_v25, %v534_v27  ;;  %v509_v33 = vadd.f32 %v508_v31, %v456_v14 }
 0x13a   : > { %v519_v34 = vmul.f32 %v513_v16, %v486_v30 }
 0x13b   : > { %v1560_v35 = vmul.f32 %v514_v18, %v509_v33 }
 0x13c   : > { %551 = vrot.lane.b32.xlu1 %v519_v34, %s1313_s13  ;;  %v535_v37 = vmul.f32 %v531_v19, %v519_v34 }
 0x13d   : > { %v536_v38 = vmul.f32 %v531_v19, %v1560_v35 }
 0x13e   : > { %v1564_v39 = vadd.f32 %v543_v36, %v535_v37  ;;  %580 = vrot.lane.b32.xlu0 %v517_v23, %s1314_s7 }
 0x13f   : > { %v1567_v40 = vadd.f32 %v543_v36, %v536_v38  ;;  %584 = vrot.lane.b32.xlu2 %v518_v24, %s1314_s7 }
 0x144   : > { %582 = vrot.lane.b32.xlu1 %v519_v34, %s1314_s7 }
 0x146   : > { %609 = vrot.lane.b32.xlu0 %v517_v23, %s1315_s6 }
 0x147   : > { %613 = vrot.lane.b32.xlu2 %v518_v24, %s1315_s6 }
 0x14c   : > { %611 = vrot.lane.b32.xlu1 %v519_v34, %s1315_s6 }
 0x14e   : > { %638 = vrot.lane.b32.xlu0 %v517_v23, %s1316_s24 }
 0x14f   : > { %642 = vrot.lane.b32.xlu2 %v518_v24, %s1316_s24 }
 0x154   : > { %640 = vrot.lane.b32.xlu1 %v519_v34, %s1316_s24 }
 0x156   : > { %667 = vrot.lane.b32.xlu0 %v517_v23, %s1317_s14 }
 0x157   : > { %671 = vrot.lane.b32.xlu2 %v518_v24, %s1317_s14 }
 0x15c   : > { %669 = vrot.lane.b32.xlu1 %v519_v34, %s1317_s14 }
 0x15e   : > { %696 = vrot.lane.b32.xlu0 %v517_v23, %s1319_s10 }
 0x15f   : > { %700 = vrot.lane.b32.xlu2 %v518_v24, %s1319_s10 }
 0x164   : > { %698 = vrot.lane.b32.xlu1 %v519_v34, %s1319_s10 }
 0x166   : > { %725 = vrot.lane.b32.xlu0 %v517_v23, %s1320_s20 }
 0x167   : > { %729 = vrot.lane.b32.xlu2 %v518_v24, %s1320_s20 }
 0x16c   : > { %727 = vrot.lane.b32.xlu1 %v519_v34, %s1320_s20 }
 0x16e   : > { %754 = vrot.lane.b32.xlu0 %v517_v23, %s1321_s21 }
 0x16f   : > { %758 = vrot.lane.b32.xlu2 %v518_v24, %s1321_s21 }
 0x174   : > { %756 = vrot.lane.b32.xlu1 %v519_v34, %s1321_s21 }
 0x176   : > { %555 = vrot.lane.b32.xlu0 %v1560_v35, %s1313_s13  ;;  %s1827_s13 = sld [smem:[#allocation17_spill]] }
 0x177   : > { %772 = vperm.xlu2 %1132, %v1514_v53  }
 0x17c   : > { %768 = vperm.xlu1 %1131, %v1508_v46   ;;  %v1615_v46 = vpop.permute.xlu1 %710  ;;  %s1218_s15 = scalar_lea.hbm %s1827_s13, 64 }
 0x17e   : > { %586 = vrot.lane.b32.xlu0 %v1560_v35, %s1314_s7  ;;  %s822_s7 = scalar_lea.hbm %s1827_s13, %s998_s16 }
 0x184   : > { %v1621_v58 = vpop.permute.xlu1 %739 }
 0x186   : > { %615 = vrot.lane.b32.xlu0 %v1560_v35, %s1315_s6  ;;  %s347_s6 = scalar_lea.vmem [#allocation7], %s985_s5 }
 0x18e   : > { %644 = vrot.lane.b32.xlu0 %v1560_v35, %s1316_s24 }
 0x191   : > { %v554_v53 = vpop.permute.xlu2 %553 }
 0x196   : > { %673 = vrot.lane.b32.xlu0 %v1560_v35, %s1317_s14  ;;  %s824_s14 = sshll.u32 %s347_s6, 4  ;;  %s825_s14 = int_to_ptr.vmem [resolvable:$true] %s824_s14 }
 0x199   : > { %v585_v59 = vpop.permute.xlu2 %584 }
 0x19e   : > { %702 = vrot.lane.b32.xlu0 %v1560_v35, %s1319_s10  ;;  %s826_s10 = sshll.u32 %s822_s7, 4  ;;  %s827_s10 = int_to_ptr.hbm [resolvable:$true] %s826_s10 }
 0x1a1   : > { %v614_v8 = vpop.permute.xlu2 %613 }
 0x1a6   : > { %731 = vrot.lane.b32.xlu0 %v1560_v35, %s1320_s20  ;;  %s801_s20 = scalar_lea.sflag [#allocation4], %s1471_s22 }
 0x1a8   : > { %v550_v60 = vpop.permute.xlu0 %549 }
 0x1a9   : > { %v560_v61 = vsel %vm559_vm7, %v550_v60, %v554_v53  ;;  %v562_v62 = vsel %vm559_vm7, %v554_v53, %v550_v60  ;;  %v643_v16 = vpop.permute.xlu2 %642 }
 0x1aa   : > { %v572_v63 = vmul.f32 %v566_v44, %v562_v62  ;;  %v573_v5 = vmul.f32 %v566_v44, %v560_v61 }
 0x1ac   : > { %v576_v6 = vadd.f32 %v572_v63, %v1556_v29  ;;  %v577_v1 = vadd.f32 %v573_v5, %v1558_v32 }
 0x1ae   : > { %v1632_v7 = vpop.permute.xlu1 %551  ;;  %760 = vrot.lane.b32.xlu0 %v1560_v35, %s1321_s21  ;;  %s1212_s21 = sshra.s32 %s827_s10, 4  ;;  %s1213_s21 = int_to_ptr.hbm [resolvable:$true] %s1212_s21 }
 0x1af   : > { %s1214_s11 = scalar_lea.hbm %s1213_s21, 16  ;;  %p1219_p10 = scmp.lt.s32.totalorder %s1213_s21, %s1827_s13 }
 0x1b0   : > { %v581_v9 = vpop.permute.xlu0 %580  ;;  %p1215_p3 = scmp.ne.s32.totalorder %s1213_s21, %s1214_s11  ;;  %p1220_p11 = scmp.lt.s32.totalorder %s1218_s15, %s1214_s11 }
 0x1b1   : > { %v589_v10 = vsel %vm588_vm8, %v581_v9, %v585_v59  ;;  %v591_v3 = vsel %vm588_vm8, %v585_v59, %v581_v9  ;;  %v672_v27 = vpop.permute.xlu2 %671 }
 0x1b2   : > { %v601_v4 = vmul.f32 %v595_v47, %v591_v3  ;;  %v602_v0 = vmul.f32 %v595_v47, %v589_v10  ;;  %p1216_p7 = pnand %p1215_p3, %p1445_p0  ;;  %p1221_p12 = por %p1220_p11, %p1219_p10 }
 0x1b4   : > { %v605_v2 = vadd.f32 %v601_v4, %v576_v6  ;;  %v606_v11 = vadd.f32 %v602_v0, %v577_v1  ;;  %p1217_p8 = pneg %p1216_p7 }
 0x1b6   : > { %v1641_v12 = vpop.permute.xlu1 %582  ;;  %p1222_p13 = pnand %p1221_p12, %p1217_p8 }
 0x1b8   : > { %v610_v13 = vpop.permute.xlu0 %609 }
 0x1b9   : > { %v618_v14 = vsel %vm617_vm9, %v610_v13, %v614_v8  ;;  %v620_v15 = vsel %vm617_vm9, %v614_v8, %v610_v13  ;;  %v701_v38 = vpop.permute.xlu2 %700 }
 0x1ba   : > { %v630_v17 = vmul.f32 %v624_v49, %v620_v15  ;;  %v631_v18 = vmul.f32 %v624_v49, %v618_v14 }
 0x1bc   : > { %v634_v19 = vadd.f32 %v630_v17, %v605_v2  ;;  %v635_v20 = vadd.f32 %v631_v18, %v606_v11 }
 0x1be   : > { %v1648_v21 = vpop.permute.xlu1 %611 }
 0x1c0   : > { %v639_v22 = vpop.permute.xlu0 %638 }
 0x1c1   : > { %v647_v23 = vsel %vm646_vm10, %v639_v22, %v643_v16  ;;  %v649_v24 = vsel %vm646_vm10, %v643_v16, %v639_v22  ;;  %v730_v60 = vpop.permute.xlu2 %729 }
 0x1c2   : > { %v659_v25 = vmul.f32 %v653_v51, %v649_v24  ;;  %v660_v26 = vmul.f32 %v653_v51, %v647_v23 }
 0x1c4   : > { %v663_v28 = vadd.f32 %v659_v25, %v634_v19  ;;  %v664_v29 = vadd.f32 %v660_v26, %v635_v20 }
 0x1c6   : > { %v641_v30 = vpop.permute.xlu1 %640 }
 0x1c8   : > { %v668_v31 = vpop.permute.xlu0 %667 }
 0x1c9   : > { %v676_v32 = vsel %vm675_vm11, %v668_v31, %v672_v27  ;;  %v678_v33 = vsel %vm675_vm11, %v672_v27, %v668_v31  ;;  %v759_v4 = vpop.permute.xlu2 %758 }
 0x1ca   : > { %v688_v34 = vmul.f32 %v682_v54, %v676_v32  ;;  %v689_v35 = vmul.f32 %v682_v54, %v678_v33 }
 0x1cc   : > { %v692_v36 = vadd.f32 %v688_v34, %v663_v28  ;;  %v693_v37 = vadd.f32 %v689_v35, %v664_v29 }
 0x1ce   : > { %v670_v42 = vpop.permute.xlu1 %669 }
 0x1d0   : > { %v697_v44 = vpop.permute.xlu0 %696 }
 0x1d1   : > { %v705_v47 = vsel %vm704_vm12, %v697_v44, %v701_v38  ;;  %v707_v49 = vsel %vm704_vm12, %v701_v38, %v697_v44 }
 0x1d2   : > { %v717_v51 = vmul.f32 %v1615_v46, %v705_v47  ;;  %v718_v53 = vmul.f32 %v1615_v46, %v707_v49 }
 0x1d4   : > { %v721_v56 = vadd.f32 %v717_v51, %v692_v36  ;;  %v722_v59 = vadd.f32 %v718_v53, %v693_v37 }
 0x1d6   : > { %v699_v54 = vpop.permute.xlu1 %698 }
 0x1d8   : > { %v726_v61 = vpop.permute.xlu0 %725 }
 0x1d9   : > { %v734_v62 = vsel %vm733_vm13, %v726_v61, %v730_v60  ;;  %v736_v63 = vsel %vm733_vm13, %v730_v60, %v726_v61 }
 0x1da   : > { %v746_v5 = vmul.f32 %v1621_v58, %v734_v62  ;;  %v747_v6 = vmul.f32 %v1621_v58, %v736_v63 }
 0x1dc   : > { %v750_v1 = vadd.f32 %v746_v5, %v721_v56  ;;  %v751_v8 = vadd.f32 %v747_v6, %v722_v59 }
 0x1de   : > { %v728_v46 = vpop.permute.xlu1 %727 }
 0x1e0   : > { %v755_v9 = vpop.permute.xlu0 %754 }
 0x1e1   : > { %v763_v2 = vsel %vm762_vm14, %v755_v9, %v759_v4  ;;  %v765_v11 = vsel %vm762_vm14, %v759_v4, %v755_v9 }
 0x1e6   : > { %v1674_v10 = vpop.permute.xlu1 %756 }
 0x1e8   : > { %v556_v3 = vpop.permute.xlu0 %555 }
 0x1e9   : > { %v561_v20 = vsel %vm559_vm7, %v1632_v7, %v556_v3  ;;  %v563_v22 = vsel %vm559_vm7, %v556_v3, %v1632_v7 }
 0x1ea   : > { %v574_v25 = vmul.f32 %v1578_v41, %v563_v22  ;;  %v575_v26 = vmul.f32 %v1578_v41, %v561_v20 }
 0x1ec   : > { %v578_v41 = vadd.f32 %v574_v25, %v1564_v39  ;;  %v579_v32 = vadd.f32 %v575_v26, %v1567_v40 }
 0x1ee   : > { %v769_v0 = vpop.permute.xlu1 %768 }
 0x1ef   : > { %v775_v13 = vmul.f32 %v769_v0, %v763_v2  ;;  %v776_v14 = vmul.f32 %v769_v0, %v765_v11 }
 0x1f0   : > { %v587_v58 = vpop.permute.xlu0 %586 }
 0x1f1   : > { %v1681_v15 = vadd.f32 %v775_v13, %v750_v1  ;;  %v1683_v16 = vadd.f32 %v776_v14, %v751_v8  ;;  %v590_v23 = vsel %vm588_vm8, %v1641_v12, %v587_v58  ;;  %v592_v24 = vsel %vm588_vm8, %v587_v58, %v1641_v12 }
 0x1f2   : > { %v603_v28 = vmul.f32 %v1584_v43, %v592_v24  ;;  %v604_v29 = vmul.f32 %v1584_v43, %v590_v23 }
 0x1f4   : > { %v607_v36 = vadd.f32 %v603_v28, %v578_v41  ;;  %v608_v37 = vadd.f32 %v604_v29, %v579_v32 }
 0x1f8   : > { %v616_v17 = vpop.permute.xlu0 %615 }
 0x1f9   : > { %v619_v27 = vsel %vm617_vm9, %v1648_v21, %v616_v17  ;;  %v621_v7 = vsel %vm617_vm9, %v616_v17, %v1648_v21 }
 0x1fa   : > { %v632_v33 = vmul.f32 %v1589_v45, %v621_v7  ;;  %v633_v34 = vmul.f32 %v1589_v45, %v619_v27 }
 0x1fc   : > { %v636_v45 = vadd.f32 %v632_v33, %v607_v36  ;;  %v637_v44 = vadd.f32 %v633_v34, %v608_v37 }
 0x200   : > { %v645_v18 = vpop.permute.xlu0 %644 }
 0x201   : > { %v648_v31 = vsel %vm646_vm10, %v641_v30, %v645_v18  ;;  %v650_v12 = vsel %vm646_vm10, %v645_v18, %v641_v30 }
 0x202   : > { %v661_v38 = vmul.f32 %v1594_v48, %v650_v12  ;;  %v662_v30 = vmul.f32 %v1594_v48, %v648_v31 }
 0x204   : > { %v665_v49 = vadd.f32 %v661_v38, %v636_v45  ;;  %v666_v51 = vadd.f32 %v662_v30, %v637_v44 }
 0x208   : > { %v674_v19 = vpop.permute.xlu0 %673 }
 0x209   : > { %v677_v21 = vsel %vm675_vm11, %v670_v42, %v674_v19  ;;  %v679_v43 = vsel %vm675_vm11, %v674_v19, %v670_v42 }
 0x20a   : > { %v690_v47 = vmul.f32 %v1601_v50, %v677_v21  ;;  %v691_v42 = vmul.f32 %v1601_v50, %v679_v43 }
 0x20c   : > { %v694_v56 = vadd.f32 %v690_v47, %v665_v49  ;;  %v695_v59 = vadd.f32 %v691_v42, %v666_v51 }
 0x210   : > { %v703_v35 = vpop.permute.xlu0 %702 }
 0x211   : > { %v706_v39 = vsel %vm704_vm12, %v699_v54, %v703_v35  ;;  %v708_v40 = vsel %vm704_vm12, %v703_v35, %v699_v54 }
 0x212   : > { %v719_v53 = vmul.f32 %v1607_v52, %v706_v39  ;;  %v720_v48 = vmul.f32 %v1607_v52, %v708_v40  ;;  %v773_v52 = vpop.permute.xlu2 %772 }
 0x214   : > { %v723_v62 = vadd.f32 %v719_v53, %v694_v56  ;;  %v724_v63 = vadd.f32 %v720_v48, %v695_v59 }
 0x218   : > { %v732_v60 = vpop.permute.xlu0 %731 }
 0x219   : > { %v735_v54 = vsel %vm733_vm13, %v728_v46, %v732_v60  ;;  %v737_v61 = vsel %vm733_vm13, %v732_v60, %v728_v46 }
 0x21a   : > { %v748_v5 = vmul.f32 %v1611_v55, %v735_v54  ;;  %v749_v50 = vmul.f32 %v1611_v55, %v737_v61  ;;  %v785_v55 = vld [vmem:[%s1800_s2] sm:$0x3] }
 0x21b   : > { %v787_v11 = vperm.slane %v785_v55, 0  ;;  %v788_v13 = vperm.slane %v785_v55, 1 }
 0x21c   : > { %v752_v6 = vadd.f32 %v748_v5, %v723_v62  ;;  %v753_v1 = vadd.f32 %v749_v50, %v724_v63 }
 0x220   : > { %v761_v8 = vpop.permute.xlu0 %760 }
 0x221   : > { %v764_v9 = vsel %vm762_vm14, %v1674_v10, %v761_v8  ;;  %v766_v46 = vsel %vm762_vm14, %v761_v8, %v1674_v10 }
 0x222   : > { %v777_v3 = vmul.f32 %v773_v52, %v764_v9  ;;  %v778_v4 = vmul.f32 %v773_v52, %v766_v46 }
 0x224   : > { %v781_v0 = vadd.f32 %v777_v3, %v752_v6  ;;  %v782_v2 = vadd.f32 %v778_v4, %v753_v1 }
 0x226   : > { %v783_v14 = vmul.f32 %v781_v0, %v1681_v15  ;;  %v784_v57 = vmul.f32 %v782_v2, %v1683_v16 }
 0x228   : > { %v791_v10 = vmul.f32 %v787_v11, %v783_v14  ;;  %v792_v58 = vmul.f32 %v788_v13, %v784_v57 }
 0x22a   : > { %794 = vst [vmem:[%s347_s6 + $0x8] sm:$0xff] %v792_v58  ;;  %v795_v17 = vadd.f32 %v792_v58, %v791_v10 }
 0x22b   : > { %793 = vst [vmem:[%s347_s6] sm:$0xff] %v791_v10 }
 0x22c   : > { %796 = vadd.xlane.f32.xlu0 %v795_v17 }
 0x22d   : > { %1225 = shalt.err (!%p1222_p13)
}
 0x22e   : > { %1009 = dma.vmem_to_hbm [thread:$0]  (%p1445_p0), %s825_s14, 256, %s827_s10, %s801_s20   ;;  %vm798_vm15 = vcmask 7168  }
 0x22f   : > { %p362_p4 = scmp.lt.s32.totalorder %s1288_s28, 1  ;;  %s1829_s6 = sld [smem:[#allocation18_spill]] }
 0x231   : > { %s1848_s28 = smov (!%p362_p4, %s1288_s28), 1 }
 0x232   : > { %s989_s22 = sshll.u32 %s1848_s28, 1 }
 0x233   : > { %s367_s19 = sadd.s32 %s989_s22, %s1548_s9 }
 0x234   : > { %s990_s27 = sshll.u32 %s367_s19, 3 }
 0x235   : > { %s369_s5 = scalar_lea.vmem %s1829_s6, %s990_s27 }
 0x29f   : > { %v797_v15 = vpop.xlane.xlu0 %796 }
 0x2a0   : > { %799 = vst.msk [vmem:[%s369_s5] sm:$0xff] %vm798_vm15, %v797_v15 }
 0x2a1 PF: > { %s1830_s21 = sld [smem:[#allocation11_spill]]  ;;  %p1026_p5 = scmp.ge.s32.totalorder %s1300_s8, 2 }
 0x2a3   : > { %p1020_p0 = pnand %p1026_p5, %p1451_p2 }
 0x2a5   : > { %p1021_p6 = pneg %p1020_p0 }
 0x2a7   : > { %s841_s11 = sand.u32 1, %s1830_s21  }
 0x2a8   : > { %s842_s14 = scalar_lea.sflag [#allocation4], %s841_s11 }
 0x2a9   : > { %1267 = dma.done.wait (%p1021_p6), %s842_s14, 256  }
 0x2aa   : > { %1269 = vsyncadd (%p1021_p6), %s842_s14, 4294967040  ;;  %s25_s8 = sadd.s32 1, %s1300_s8   ;;  %s1832_s9 = sld [smem:[#allocation12_spill]] }
 0x2ab   : > { %p22_p9 = scmp.ge.s32.totalorder %s25_s8, 6   ;;  %s1833_s10 = sld [smem:[#allocation13_spill]] }
 0x2ac   : > { %s1834_s24 = smov %s1276_s25  ;;  %s1835_s25 = smov %s1280_s26 }
 0x2ad   : > { %s1836_s26 = smov %s1461_s18  ;;  %s1837_s27 = smov %s1292_s29 }
 0x2ae   : > { %s1838_s28 = smov %s1296_s30  ;;  %24 = sbr.rel (!%p22_p9) target bundleno = 12 (0xc), region = 108 }
 0x2b0   : > { %s1839_s29 = smov %s1832_s9 }
 0x2b1   : > { %s1840_s30 = smov %s1833_s10 }
 0x2b3   :  { %859 = vsyncpa [#allocation3], 1 }
 0x2b4   :  { %861 = vsyncpa [#allocation3 + $0x1], 1 }
 0x2b5   :  { %862 = vsyncpa [#allocation6], 1 }
 0x2b6   :  { %863 = vsyncpa [#allocation4], 1 }
 0x2b7   :  { %865 = vsyncpa [#allocation4 + $0x1], 1 }

</bundles_post_ra>
